<compile_context>
chip_gen: v7x
topology: tpu7x:2x2x1
jax: 0.10.0
libtpu: 0.0.40
codegen_flags: <defaults>
</compile_context>

<pallas_src>
import math
import functools

import jax
import jax.numpy as jnp
from jax.experimental import pallas as pl
from jax.experimental.pallas import tpu as pltpu


_ONEHOT_MAX_V = 1024      # above this the HBM DMA row-gather path wins on all gens
_VOCAB_CHUNK = 512        # vocab-axis chunk for the one-hot path
_GATHER_INFLIGHT = 16     # max row DMAs in flight per tile (gather path)


def _round_up(x, m):
    return (x + m - 1) // m * m


def _vmem_capacity_bytes():
    """Per-TensorCore VMEM capacity; conservative 64 MiB (v7x) if unknown."""
    try:
        return int(pltpu.get_tpu_info().vmem_capacity_bytes)
    except Exception:
        return 64 << 20


def _clamp_vmem(est_bytes, vmem_cap):
    # Request what we estimate we need (plus margin) but never the whole chip
    # VMEM: leave headroom for compiler scratch / pipeline internals.
    return int(min(max(est_bytes + (8 << 20), 32 << 20), vmem_cap - (8 << 20)))


# ---------------------------------------------------------------------------
# Path 1: small vocab, VMEM-resident table, chunked one-hot MXU gather
# ---------------------------------------------------------------------------
def _onehot_kernel(ids_ref, table_ref, out_ref, *, scale, v_chunk):
    """Gather `tile` embedding rows via chunked one-hot @ table MXU matmuls.

    ids_ref   : VMEM (tile, 1) int32   token ids for this tile (on sublanes)
    table_ref : VMEM (V, D)            full embedding table (resident, 1 copy)
    out_ref   : VMEM (tile, D)         output block
    """
    tile, D = out_ref.shape
    V = table_ref.shape[0]
    ids = ids_ref[...]                                       # (tile, 1) int32

    acc = jnp.zeros((tile, D), jnp.float32)
    # Static (unrolled) chunk loop: live intermediates capped at (tile, v_chunk).
    for c0 in range(0, V, v_chunk):
        vc = min(v_chunk, V - c0)
        col = jax.lax.broadcasted_iota(jnp.int32, (tile, vc), 1) + c0
        # Exact 0/1 one-hot; an out-of-range id yields an all-zero row.
        onehot = (col == ids).astype(table_ref.dtype)
        acc = acc + jnp.dot(onehot, table_ref[pl.ds(c0, vc), :],
                            preferred_element_type=jnp.float32)

    # Single full-tile f32 scale + one unmasked lane/sublane-dense store.
    out_ref[...] = (acc * jnp.float32(scale)).astype(out_ref.dtype)


def _onehot_path(flat_ids, table, *, tile_eff, n_pad, scale, vmem_cap):
    V, D = table.shape
    itemsize = jnp.dtype(table.dtype).itemsize
    v_chunk = min(_VOCAB_CHUNK, V)
    ids_col = flat_ids.reshape(n_pad, 1)

    est_bytes = (V * D * itemsize                    # resident table, single copy
                 + 2 * tile_eff * 4                  # ids blocks (double buffered)
                 + 2 * tile_eff * D * itemsize       # out blocks (double buffered)
                 + tile_eff * D * 4                  # f32 accumulator / MXU result
                 + 2 * tile_eff * v_chunk * 4)       # iota + one-hot chunk
    vmem_limit = _clamp_vmem(est_bytes, vmem_cap)

    kernel = functools.partial(_onehot_kernel, scale=scale, v_chunk=v_chunk)
    return pl.pallas_call(
        kernel,
        out_shape=jax.ShapeDtypeStruct((n_pad, D), table.dtype),
        grid=(n_pad // tile_eff,),
        in_specs=[
            # token ids, blocked (tile, 1): ids on sublanes, pipeline with grid
            pl.BlockSpec((tile_eff, 1), lambda i: (i, 0)),
            # full embedding table, resident in VMEM as a single copy
            pl.BlockSpec(memory_space=pltpu.MemorySpace.VMEM),
        ],
        out_specs=pl.BlockSpec((tile_eff, D), lambda i: (i, 0)),
        compiler_params=pltpu.CompilerParams(
            dimension_semantics=("parallel",),   # independent tiles -> megacore
            vmem_limit_bytes=vmem_limit,
        ),
    )(ids_col, table)


# ---------------------------------------------------------------------------
# Path 2: realistic vocab, HBM table + scalar-prefetched ids + DMA row gather
# ---------------------------------------------------------------------------
def _gather_kernel(ids_ref, table_hbm, out_ref, rows_ref, sem, *, scale, nbuf):
    """Per-tile HBM row gather with up to `nbuf` row DMAs in flight.

    ids_ref   : SMEM (n_pad,) int32   all token ids (scalar-prefetched)
    table_hbm : HBM  (V, D)           embedding table (never VMEM resident)
    out_ref   : VMEM (tile, D)        output block
    rows_ref  : VMEM (tile, D)        scratch: gathered rows
    sem       : DMA semaphores (nbuf,)
    """
    tile, D = out_ref.shape
    V = table_hbm.shape[0]
    base = pl.program_id(0) * tile
    depth = min(nbuf, tile)

    def issue(t):
        row = ids_ref[base + t]
        row = jnp.minimum(jnp.maximum(row, 0), V - 1)   # clamp OOB (torch asserts)
        pltpu.make_async_copy(
            table_hbm.at[pl.ds(row, 1), :],
            rows_ref.at[pl.ds(t, 1), :],
            sem.at[t % nbuf],
        ).start()

    def wait(t):
        pltpu.make_async_copy(
            table_hbm.at[pl.ds(0, 1), :],
            rows_ref.at[pl.ds(t, 1), :],
            sem.at[t % nbuf],
        ).wait()

    # Prime the DMA window.
    @pl.loop(0, depth)
    def _(t):
        issue(t)

    # Steady state: retire the oldest row, issue the next (keeps `depth` in flight).
    @pl.loop(depth, tile)
    def _(t):
        wait(t - depth)
        issue(t)

    # Drain the tail.
    @pl.loop(tile - depth, tile)
    def _(t):
        wait(t)

    # Single full-tile f32 scale + one lane/sublane-dense store.
    out_ref[...] = (rows_ref[...].astype(jnp.float32) * jnp.float32(scale)
                    ).astype(out_ref.dtype)


def _gather_path(flat_ids, table, *, tile_eff, n_pad, scale, vmem_cap):
    V, D = table.shape
    itemsize = jnp.dtype(table.dtype).itemsize
    nbuf = min(_GATHER_INFLIGHT, tile_eff)

    est_bytes = (2 * tile_eff * D * itemsize      # out blocks (double buffered)
                 + tile_eff * D * itemsize        # gathered-rows scratch
                 + tile_eff * D * 4)              # f32 scale intermediate
    vmem_limit = _clamp_vmem(est_bytes, vmem_cap)

    kernel = functools.partial(_gather_kernel, scale=scale, nbuf=nbuf)
    grid_spec = pltpu.PrefetchScalarGridSpec(
        num_scalar_prefetch=1,                          # flat ids -> SMEM
        grid=(n_pad // tile_eff,),
        in_specs=[pl.BlockSpec(memory_space=pl.ANY)],   # table stays in HBM
        out_specs=pl.BlockSpec((tile_eff, D), lambda i, ids: (i, 0)),
        scratch_shapes=[
            pltpu.VMEM((tile_eff, D), table.dtype),     # gathered rows
            pltpu.SemaphoreType.DMA((nbuf,)),           # DMA ring
        ],
    )
    return pl.pallas_call(
        kernel,
        out_shape=jax.ShapeDtypeStruct((n_pad, D), table.dtype),
        grid_spec=grid_spec,
        compiler_params=pltpu.CompilerParams(
            dimension_semantics=("parallel",),
            vmem_limit_bytes=vmem_limit,
        ),
    )(flat_ids, table)


# ---------------------------------------------------------------------------
# Public wrapper
# ---------------------------------------------------------------------------
def embedding_forward(x_ids, table, *, tile=512):
    """x_ids: [B, S] int token ids; table: [V, D] float. Returns [B, S, D]."""
    B, S = x_ids.shape
    V, D = table.shape
    N = B * S
    scale = math.sqrt(D)
    itemsize = jnp.dtype(table.dtype).itemsize
    table_bytes = V * D * itemsize

    vmem_cap = _vmem_capacity_bytes()
    resident_budget = max(vmem_cap - (16 << 20), 8 << 20)

    # Tile selection: big dense tiles amortize per-step overhead; shrink for
    # small inputs (multiple of 8 sublanes) and keep >= 2 tiles so v7x's two
    # TensorCores both get work.
    tile_eff = min(tile, _round_up(N, 8))
    if _round_up(N, tile_eff) // tile_eff < 2 and N > 8:
        tile_eff = min(tile_eff, _round_up((N + 1) // 2, 8))
    n_pad = _round_up(N, tile_eff)

    flat_ids = x_ids.reshape(N).astype(jnp.int32)
    if n_pad != N:
        flat_ids = jnp.pad(flat_ids, (0, n_pad - N))  # tail gathers row 0, sliced off

    # Path selection: one-hot MXU gather only for tiny vocabs whose table fits
    # comfortably resident (v7x: 64 MiB VMEM); otherwise HBM DMA row gather,
    # which is the right regime for all realistic vocabularies (bandwidth floor).
    use_onehot = (V <= _ONEHOT_MAX_V) and (2 * table_bytes <= resident_budget)

    if use_onehot:
        out_flat = _onehot_path(flat_ids, table, tile_eff=tile_eff, n_pad=n_pad,
                                scale=scale, vmem_cap=vmem_cap)
    else:
        out_flat = _gather_path(flat_ids, table, tile_eff=tile_eff, n_pad=n_pad,
                                scale=scale, vmem_cap=vmem_cap)

    return out_flat[:N].reshape(B, S, D)


if __name__ == "__main__":
    d_model = 128
    batch, seq = 2, 8

    key = jax.random.PRNGKey(0)
    k_tab_s, k_ids_s, k_tab_l, k_ids_l = jax.random.split(key, 4)

    # --- small vocab: resident-table one-hot MXU path ---
    vocab_small = 64
    table_s = jax.random.normal(k_tab_s, (vocab_small, d_model), dtype=jnp.float32)
    ids_s = jax.random.randint(k_ids_s, (batch, seq), 0, vocab_small, dtype=jnp.int32)
    out_s = jax.block_until_ready(embedding_forward(ids_s, table_s))
    ref_s = jnp.take(table_s, ids_s.reshape(-1), axis=0).reshape(
        batch, seq, d_model) * math.sqrt(d_model)
    assert out_s.shape == (batch, seq, d_model)
    assert jnp.allclose(out_s, ref_s, atol=1e-4, rtol=1e-5), "one-hot path mismatch"

    # --- larger vocab: HBM-table DMA row-gather path ---
    vocab_large = 4096
    table_l = jax.random.normal(k_tab_l, (vocab_large, d_model), dtype=jnp.float32)
    ids_l = jax.random.randint(k_ids_l, (batch, seq), 0, vocab_large, dtype=jnp.int32)
    out_l = jax.block_until_ready(embedding_forward(ids_l, table_l))
    ref_l = jnp.take(table_l, ids_l.reshape(-1), axis=0).reshape(
        batch, seq, d_model) * math.sqrt(d_model)
    assert out_l.shape == (batch, seq, d_model)
    assert jnp.allclose(out_l, ref_l, atol=1e-4, rtol=1e-5), "gather path mismatch"

    print("KERNEL_OK")
</pallas_src>

<mosaic_0001>
module attributes {stable_mosaic.version = 11 : i64} {
  func.func @_onehot_kernel(%arg0: i32, %arg1: memref<8x1xi32, #tpu.memory_space<vmem>>, %arg2: memref<64x128xf32, #tpu.memory_space<vmem>>, %arg3: memref<8x128xf32, #tpu.memory_space<vmem>>) attributes {dimension_semantics = [#tpu.dimension_semantics<parallel>], iteration_bounds = array<i64: 2>, scalar_prefetch = 0 : i64, scratch_operands = 0 : i64, tpu.core_type = #tpu.core_type<tc>, window_params = [{transform_indices = @transform_0, window_bounds = array<i64: 8, 1>}, {pipeline_mode = #tpu.pipeline_mode<synchronous>, transform_indices = @transform_1, window_bounds = array<i64: 64, 128>}, {transform_indices = @transform_2, window_bounds = array<i64: 8, 128>}]} {
    %c0 = arith.constant 0 : index
    %c0_0 = arith.constant 0 : index
    %0 = vector.load %arg1[%c0, %c0_0] : memref<8x1xi32, #tpu.memory_space<vmem>>, vector<8x1xi32>
    %cst = arith.constant 0.000000e+00 : f32
    %1 = vector.broadcast %cst : f32 to vector<8x128xf32>
    %2 = tpu.iota {dimensions = array<i32: 1>} : vector<8x64xi32>
    %c0_i32 = arith.constant 0 : i32
    %3 = vector.broadcast %c0_i32 : i32 to vector<8x64xi32>
    %4 = arith.addi %2, %3 : vector<8x64xi32>
    %5 = vector.broadcast %0 : vector<8x1xi32> to vector<8x64xi32>
    %6 = arith.cmpi eq, %4, %5 : vector<8x64xi32>
    %7 = arith.extui %6 : vector<8x64xi1> to vector<8x64xi32>
    %8 = arith.sitofp %7 : vector<8x64xi32> to vector<8x64xf32>
    %c0_1 = arith.constant 0 : index
    %c0_2 = arith.constant 0 : index
    %9 = vector.load %arg2[%c0_1, %c0_2] : memref<64x128xf32, #tpu.memory_space<vmem>>, vector<64x128xf32>
    %cst_3 = arith.constant dense<0.000000e+00> : vector<8x128xf32>
    %10 = tpu.matmul %8, %9, %cst_3 {dimension_numbers = #tpu.dot_dimension_numbers<[1], [0], [0], [1], [0, 0, 1, 1], [], []>} : vector<8x64xf32>, vector<64x128xf32>, vector<8x128xf32> -> vector<8x128xf32>
    %11 = arith.addf %1, %10 : vector<8x128xf32>
    %cst_4 = arith.constant 11.3137083 : f32
    %12 = vector.broadcast %cst_4 : f32 to vector<8x128xf32>
    %13 = arith.mulf %11, %12 : vector<8x128xf32>
    %c0_5 = arith.constant 0 : index
    %c0_6 = arith.constant 0 : index
    %14 = vector.load %arg3[%c0_5, %c0_6] : memref<8x128xf32, #tpu.memory_space<vmem>>, vector<8x128xf32>
    tpu.vector_store %arg3[%c0_5, %c0_6], %13 {strides = array<i32>} : memref<8x128xf32, #tpu.memory_space<vmem>>, vector<8x128xf32>,
    return
  }
  func.func @transform_0(%arg0: i32) -> (i32, i32) {
    %c0_i32 = arith.constant 0 : i32
    %c0_i32_0 = arith.constant 0 : i32
    return %arg0, %c0_i32 : i32, i32
  }
  func.func @transform_1(%arg0: i32) -> (i32, i32) {
    %c0_i32 = arith.constant 0 : i32
    %c0_i32_0 = arith.constant 0 : i32
    %c0_i32_1 = arith.constant 0 : i32
    return %c0_i32, %c0_i32_0 : i32, i32
  }
  func.func @transform_2(%arg0: i32) -> (i32, i32) {
    %c0_i32 = arith.constant 0 : i32
    %c0_i32_0 = arith.constant 0 : i32
    return %arg0, %c0_i32 : i32, i32
  }
}

</mosaic_0001>

<bundles_post_ra>
// kernel: tpu_custom_call.1
= control target key start
LH: loop header
LB: loop body
LE: loop exit
PB: predicated region body
PF: predicated region fallthrough
CT: control target
= control target key end

     0   :  { %7 = vsyncpa [#allocation3], 0  ;;  %s697_s0 = inlined_call_operand.vmem [shape: s32[16,1], index: 0, kind: input, shape index: {}]   ;;  %s698_s1 = inlined_call_operand.hbm [shape: f32[64,128], index: 1, kind: input, shape index: {}]   ;;  %s699_s2 = inlined_call_operand.hbm [shape: f32[16,128], index: 2, kind: output, shape index: {}]  }
   0x1   :  { %8 = vsyncpa [#allocation4], 0 }
   0x2   :  { %10 = vsyncpa [#allocation4 + $0x1], 0  ;;  %s562_s9 = smov 0   ;;  %s564_s10 = smov 0  }
   0x3   :  { %s566_s11 = smov 0   ;;  %s568_s12 = smov 0  }
   0x4 LB: > { %s583_s13 = sadd.s32 4294967295, %s537_s12   ;;  %s332_s14 = sadd.s32 4294967294, %s537_s12   ;;  %s537_s12 = sphi %s568_s12, %s715_s12   ;;  %s533_s11 = sphi %s566_s11, %s714_s11   ;;  %s529_s10 = sphi %s564_s10, %s713_s10   ;;  %s525_s9 = sphi %s562_s9, %s712_s9  }
   0x5   : > { %s587_s15 = sadd.s32 1, %s537_s12   ;;  %s70_s16 = sadd.s32 1, %s533_s11 }
   0x6   : > { %s67_s17 = ssub.s32 %s537_s12, %s587_s15  ;;  %p80_p0 = scmp.ne.s32.totalorder %s533_s11, %s529_s10 }
   0x7   : > { %p68_p1 = scmp.eq.s32.totalorder %s67_s17, 0  ;;  %p81_p2 = scmp.eq.s32.totalorder %s583_s13, 1 }
   0x8   : > { %p86_p3 = scmp.ne.s32.totalorder %s529_s10, %s525_s9  ;;  %p87_p4 = scmp.eq.s32.totalorder %s332_s14, 1 }
   0x9   : > { %s598_s18 = scalar_select %p68_p1, %s533_s11, %s70_s16  }
   0xa   : > { %p600_p5 = por %p81_p2, %p80_p0  ;;  %p604_p6 = por %p87_p4, %p86_p3 }
   0xb   : > { %p333_p7 = scmp.ge.s32.totalorder %s537_s12, 1  ;;  %p94_p8 = scmp.lt.s32.totalorder %s537_s12, 3 }
   0xc   : > { %s703_s19 = scalar_select %p600_p5, 1, 0 }
   0xd   : > { %s704_s20 = scalar_select %p604_p6, 1, 0 }
   0xe   : > { %p700_p9 = scmp.eq.s32.totalorder %s583_s13, 0  ;;  %p611_p10 = pnand %p333_p7, %p94_p8 }
   0xf   : > { %s539_s22 = smov [#allocation2]   ;;  %s443_s27 = scalar_lea.hbm %s698_s1, 1024 }
  0x10   : > { %s705_s21 = scalar_select %p611_p10, 1, 0 }
  0x11   : > { %s106_s23 = sshll.u32 %s539_s22, 4  ;;  %p392_p11 = pneg %p611_p10  ;;  %s107_s23 = int_to_ptr.vmem [resolvable:$true] %s106_s23 }
  0x12   : > { %p444_p13 = scmp.ne.s32.totalorder %s698_s1, %s443_s27  ;;  %p450_p3 = scmp.lt.u32.totalorder %s443_s27, %s698_s1 }
  0x13   : > { %p619_p12 = pnand %p700_p9, %p392_p11 }
  0x15   : > { %p445_p0 = pneg %p619_p12 }
  0x17   : > { %p446_p1 = pnand %p445_p0, %p444_p13 }
  0x19   : > { %p447_p2 = pneg %p446_p1 }
  0x1b   : > { %p452_p4 = pnand %p450_p3, %p447_p2 }
  0x1d   : > { %455 = shalt.err (!%p452_p4)
}
  0x1e   : > { %s456_s4 = scalar_lea.vmem %s107_s23, 1024  ;;  %p464_p9 = scmp.lt.s32.totalorder %s107_s23, %s107_s23 }
  0x1f   : > { %p457_p7 = scmp.ne.s32.totalorder %s107_s23, %s456_s4  ;;  %p465_p6 = scmp.lt.s32.totalorder %s456_s4, %s456_s4 }
  0x21   : > { %p459_p8 = pnand %p457_p7, %p445_p0  ;;  %p466_p5 = por %p465_p6, %p464_p9 }
  0x23   : > { %p460_p11 = pneg %p459_p8 }
  0x25   : > { %p467_p10 = pnand %p466_p5, %p460_p11 }
  0x27   : > { %470 = shalt.err (!%p467_p10)
}
  0x28   : > { %s540_s5 = smov 128   ;;  %s541_s6 = smov 8  }
  0x29   : > { %395 = dma.hbm_to_vmem [thread:$0]  (!%p619_p12), %s698_s1, 1024, %s107_s23, [#allocation3], %s540_s5, %s540_s5, %s541_s6  }
  0x2a   : > { %p707_p13 = scmp.ne.s32.totalorder %s705_s21, 0 }
  0x2b   : > { %p708_p1 = scmp.eq.s32.totalorder (!%p707_p13), %s583_s13, 0 }
  0x2c   : > { %129 = sbr.rel (%p707_p13) target bundleno = 417 (0x1a1), region = 28 }
  0x33   : > { %516 = dma.done.wait (%p708_p1), [#allocation3], 1024   ;;  %p709_p0 = pmov %p708_p1 }
  0x34   : > { %p150_p5 = scmp.lt.s32.totalorder %s583_s13, 1  ;;  %v542_v0 = vmov 0   ;;  %v543_v1 = vmov 0.0|0.0   ;;  %v163_v3 = vld [vmem:[#allocation2] sm:$0xff]  ;;  %v164_v4 = vld [vmem:[#allocation2 + $0x8] sm:$0xff]  ;;  %v165_v6 = vld [vmem:[#allocation2 + $0x10] sm:$0xff]  ;;  %v155_v16 = vlaneseq }
  0x35   : > { %518 = vsyncadd (%p709_p0), [#allocation3], 4294966272  ;;  %442 = vset.pattern.permute.xlu0 %v542_v0  ;;  %374 = vmatprep.subr.bf16.mxu0 %v543_v1  ;;  %v375_v5 = vpack.c.bf16 %v164_v4, %v163_v3  ;;  %v166_v7 = vld [vmem:[#allocation2 + $0x18] sm:$0xff]  ;;  %vm544_vm0 = vmmov 0   ;;  %v545_v8 = vmov 0.0   ;;  %v167_v10 = vld [vmem:[#allocation2 + $0x20] sm:$0xff] }
  0x36   : > { %s151_s14 = scalar_select %p150_p5, %s583_s13, 1  ;;  %371 = vmatprep.mubr.msk.f32.mxu0 %vm544_vm0, %v545_v8  ;;  %v378_v9 = vpack.c.bf16 %v166_v7, %v165_v6  ;;  %v168_v11 = vld [vmem:[#allocation2 + $0x28] sm:$0xff]  ;;  %v169_v13 = vld [vmem:[#allocation2 + $0x30] sm:$0xff]  ;;  %v170_v14 = vld [vmem:[#allocation2 + $0x38] sm:$0xff]  ;;  %v156_v17 = vand.u32 127, %v155_v16  ;;  %vm171_vm1 = vcmask 523264  }
  0x37   : > { %376 = vmatpush3.bf16.msra.mxu0 %v375_v5  ;;  %v381_v12 = vpack.c.bf16 %v168_v11, %v167_v10  ;;  %v384_v15 = vpack.c.bf16 %v170_v14, %v169_v13  ;;  %s147_s23 = sand.u32 1, %s529_s10   ;;  %s343_s25 = sshll.u32 %s583_s13, 7 }
  0x38   : > { %s339_s16 = sshll.u32 %s151_s14, 3  ;;  %377 = vmatprep.subr.bf16.mxu0 %v543_v1  ;;  %s338_s24 = sshll.u32 %s147_s23, 3 }
  0x39   : > { %s153_s21 = scalar_lea.vmem %s697_s0, %s339_s16  ;;  %s149_s26 = scalar_lea.vmem [#allocation5], %s338_s24 }
  0x3a   : > { %v154_v2 = vld [vmem:[%s153_s21] sm:$0xff]  ;;  %s261_s27 = sshll.u32 %s149_s26, 4  ;;  %s655_s30 = scalar_lea.hbm %s699_s2, %s343_s25  ;;  %s657_s27 = int_to_ptr.vmem [resolvable:$true] %s261_s27 }
  0x3b   : > { %158 = vperm.xlu0 %442, %v154_v2   ;;  %379 = vmatpush3.bf16.msra.mxu0 %v378_v9  ;;  %s248_s3 = scalar_lea.sflag [#allocation4], %s147_s23  ;;  %s471_s4 = scalar_lea.vmem %s657_s27, 128 }
  0x3c   : > { %380 = vmatprep.subr.bf16.mxu0 %v543_v1  ;;  %p472_p6 = scmp.ne.s32.totalorder %s657_s27, %s471_s4  ;;  %p710_p9 = scmp.ne.s32.totalorder %s703_s19, 0 }
  0x3d   : > { %s546_s13 = smov [#allocation5]  }
  0x3e   : > { %p473_p10 = pnand %p472_p6, %p710_p9  ;;  %s475_s5 = sshll.u32 %s546_s13, 4  ;;  %s476_s5 = int_to_ptr.vmem [resolvable:$false] %s475_s5 }
  0x3f   : > { %382 = vmatpush3.bf16.msra.mxu0 %v381_v12  ;;  %s477_s6 = scalar_lea.vmem %s476_s5, 256  ;;  %p478_p2 = scmp.lt.s32.totalorder %s657_s27, %s476_s5 }
  0x40   : > { %383 = vmatprep.subr.bf16.mxu0 %v543_v1  ;;  %p474_p12 = pneg %p473_p10  ;;  %p479_p3 = scmp.lt.s32.totalorder %s477_s6, %s471_s4 }
  0x42   : > { %p480_p4 = por %p479_p3, %p478_p2 }
  0x43   : > { %385 = vmatpush3.bf16.msra.mxu0 %v384_v15 }
  0x44   : > { %p481_p7 = pnand %p480_p4, %p474_p12 }
  0xba   : > { %v159_v18 = vpop.permute.xlu0 %158 }
  0xbb   : > { %vm160_vm2 = vcmp.eq.s32.totalorder %v156_v17, %v159_v18 }
  0xbc   : > { %v340_v19 = vsel %vm160_vm2, 1.0, %v545_v8 }
  0xbd   : > { %372 = vmatmul.mubr.msk.f32.vlgmr.msra.gmra.mrb[0].mxu0 %vm171_vm1, %v340_v19 }
 0x190   : > { %v241_v20 = vpop.f32.mrb[0].mxu0 }
 0x191   : > { %v245_v21 = vmul.f32 11.313708, %v241_v20  ;;  %v373_v22 = vpop.f32.mrb[1].mxu0 }
 0x193   : > { %246 = vst [vmem:[%s149_s26] sm:$0xff] %v245_v21 }
 0x194   : > { %484 = shalt.err (!%p481_p7)
}
 0x195   : > { %s485_s7 = scalar_lea.hbm %s655_s30, 128  ;;  %s489_s16 = scalar_lea.hbm %s699_s2, 256 }
 0x196   : > { %p486_p8 = scmp.ne.s32.totalorder %s655_s30, %s485_s7  ;;  %p490_p1 = scmp.lt.u32.totalorder %s655_s30, %s699_s2 }
 0x197   : > { %p491_p0 = scmp.lt.u32.totalorder %s489_s16, %s485_s7  ;;  %p493_p6 = scmp.lt.u32.totalorder %s485_s7, %s655_s30 }
 0x198   : > { %p487_p11 = pnand %p486_p8, %p710_p9 }
 0x199   : > { %p492_p5 = por %p491_p0, %p490_p1 }
 0x19a   : > { %p488_p13 = pneg %p487_p11 }
 0x19b   : > { %p494_p10 = por %p493_p6, %p492_p5 }
 0x19d   : > { %p495_p12 = pnand %p494_p10, %p488_p13 }
 0x19f   : > { %498 = shalt.err (!%p495_p12)
}
 0x1a0   : > { %390 = dma.vmem_to_hbm [thread:$0]  (%p710_p9), %s657_s27, 128, %s655_s30, %s248_s3  }
 0x1a1 PF: > { %p402_p2 = scmp.ge.s32.totalorder %s537_s12, 2  ;;  %s273_s21 = sand.u32 1, %s525_s9  }
 0x1a2   : > { %p711_p3 = scmp.ne.s32.totalorder %s704_s20, 0  ;;  %s274_s23 = scalar_lea.sflag [#allocation4], %s273_s21 }
 0x1a4   : > { %p397_p4 = pnand %p402_p2, %p711_p3 }
 0x1a6   : > { %520 = dma.done.wait (!%p397_p4), %s274_s23, 128  }
 0x1a7   : > { %522 = vsyncadd (!%p397_p4), %s274_s23, 4294967168  ;;  %p13_p7 = scmp.ge.s32.totalorder %s587_s15, 4   ;;  %s712_s9 = smov %s529_s10 }
 0x1a8   : > { %s713_s10 = smov %s533_s11  ;;  %s714_s11 = smov %s598_s18 }
 0x1a9   : > { %s715_s12 = smov %s587_s15  ;;  %15 = sbr.rel (!%p13_p7) target bundleno = 4 (0x4), region = 68 }
 0x1b0   :  { %279 = vsyncpa [#allocation3], 1 }
 0x1b1   :  { %281 = vsyncpa [#allocation3 + $0x1], 1 }
 0x1b2   :  { %282 = vsyncpa [#allocation4], 1 }
 0x1b3   :  { %284 = vsyncpa [#allocation4 + $0x1], 1 }

</bundles_post_ra>
